<compile_context>
chip_gen: v7x
topology: tpu7x:2x2x1
jax: 0.10.0
libtpu: 0.0.40
codegen_flags: <defaults>
</compile_context>

<pallas_src>
import jax
import jax.numpy as jnp
from jax.experimental import pallas as pl
from jax.experimental.pallas import tpu as pltpu


def naive_attention_kernel(emb_ref, recip_ref, w_ref, b_ref, out_ref, acc_ref):
    # emb_ref  : (TS, B, D)  current sequence tile
    # recip_ref: (B, 1)      1 / sum(mask, axis=0)
    # w_ref    : (O, D)      nn.Linear weight, native layout (no transpose anywhere)
    # b_ref    : (1, O)      nn.Linear bias
    # out_ref  : (B, O)
    # acc_ref  : (B, D) f32  running sum over the sequence axis
    s = pl.program_id(0)

    @pl.when(s == 0)
    def _init():
        acc_ref[...] = jnp.zeros_like(acc_ref)

    # Unmasked sum over S, exactly like torch.sum(x[0], axis=0) in the module.
    acc_ref[...] += jnp.sum(emb_ref[...], axis=0)

    @pl.when(s == pl.num_programs(0) - 1)
    def _finalize():
        # (B, D) x (O, D) contracted on D -> (B, O) on the MXU.
        out = jax.lax.dot_general(
            acc_ref[...], w_ref[...],
            dimension_numbers=(((1,), (1,)), ((), ())),
            preferred_element_type=jnp.float32)
        # Masked mean applied AFTER the matmul (per-row scale commutes with the dot).
        out_ref[...] = (out * recip_ref[...] + b_ref[...]).astype(out_ref.dtype)


def naive_attention(emb, mask, weight, bias):
    """Forward of NaiveAttention.

    emb:    (S, B, D) f32  -- x[0]
    mask:   (S, B, 1) f32  -- x[1]
    weight: (O, D)    f32  -- nn.Linear.weight
    bias:   (O,)      f32  -- nn.Linear.bias
    returns (B, O)    f32
    """
    S, B, D = emb.shape
    O = weight.shape[0]

    # Masked-mean denominator reduced once outside the kernel; the kernel never sees the
    # (S,B,1) mask.  Exact f32 reciprocal preserves torch semantics (inf for a zero-count
    # row).  pl.reciprocal(..., approx=True) in-kernel is an equivalent EUP-side option.
    recip = 1.0 / jnp.sum(mask, axis=0)            # (B, 1)
    b2d = bias.reshape(1, O)

    # Sequence tile: whole S when small, otherwise ~8 MiB of double-buffered emb per tile
    # so the pipeline fits the default scoped VMEM on every TPU generation.
    bytes_per_row = B * D * emb.dtype.itemsize
    ts_max = max(8, (8 * 1024 * 1024) // (2 * bytes_per_row) // 8 * 8)
    ts = S if S <= ts_max else ts_max
    num_tiles = pl.cdiv(S, ts)
    s_pad = num_tiles * ts
    if s_pad != S:
        # Zero rows do not change the sum, so zero-padding keeps the semantics exact.
        emb = jnp.pad(emb, ((0, s_pad - S), (0, 0), (0, 0)))

    return pl.pallas_call(
        naive_attention_kernel,
        out_shape=jax.ShapeDtypeStruct((B, O), jnp.float32),
        grid=(num_tiles,),
        in_specs=[
            pl.BlockSpec((ts, B, D), lambda s: (s, 0, 0)),   # streamed over S
            pl.BlockSpec((B, 1), lambda s: (0, 0)),          # resident
            pl.BlockSpec((O, D), lambda s: (0, 0)),          # resident
            pl.BlockSpec((1, O), lambda s: (0, 0)),          # resident
        ],
        out_specs=pl.BlockSpec((B, O), lambda s: (0, 0)),    # same block all steps
        scratch_shapes=[pltpu.VMEM((B, D), jnp.float32)],
        compiler_params=pltpu.CompilerParams(
            dimension_semantics=("arbitrary",)),             # S is a reduction axis
    )(emb, recip, weight, b2d)


if __name__ == "__main__":
    # Small shapes consistent with the module: seq=8, batch=2, dimbed=32, dimout=8
    S, B, D, O = 8, 2, 32, 8
    key = jax.random.PRNGKey(0)
    k_emb, k_len, k_w, k_b = jax.random.split(key, 4)

    emb = jax.random.normal(k_emb, (S, B, D), dtype=jnp.float32)

    # Padding mask: each batch element has a random valid length in [1, S]
    lengths = jax.random.randint(k_len, (B,), minval=1, maxval=S + 1)       # (B,)
    pos = jnp.arange(S)[:, None]                                            # (S, 1)
    mask = (pos < lengths[None, :]).astype(jnp.float32)[..., None]          # (S, B, 1)
    emb = emb * mask  # padded positions embed to zero, as the module's usage assumes

    # nn.Linear(dimbed, dimout) parameters: W (O, D), b (O,)
    weight = jax.random.normal(k_w, (O, D), dtype=jnp.float32) * 0.1
    bias = jax.random.normal(k_b, (O,), dtype=jnp.float32) * 0.1

    out = naive_attention(emb, mask, weight, bias)
    out = jax.block_until_ready(out)

    # Pure-JAX reference of the exact module semantics
    x_avg_ref = jnp.sum(emb, axis=0) / jnp.sum(mask, axis=0)
    ref = x_avg_ref @ weight.T + bias
    assert out.shape == (B, O)
    assert jnp.allclose(out, ref, atol=1e-5, rtol=1e-5)

    print("KERNEL_OK")
</pallas_src>

<mosaic_0001>
module attributes {stable_mosaic.version = 11 : i64} {
  func.func @naive_attention_kernel(%arg0: i32, %arg1: memref<8x2x32xf32, #tpu.memory_space<vmem>>, %arg2: memref<2x1xf32, #tpu.memory_space<vmem>>, %arg3: memref<8x32xf32, #tpu.memory_space<vmem>>, %arg4: memref<1x8xf32, #tpu.memory_space<vmem>>, %arg5: memref<2x8xf32, #tpu.memory_space<vmem>>, %arg6: memref<2x32xf32, #tpu.memory_space<vmem>>) attributes {dimension_semantics = [#tpu.dimension_semantics<arbitrary>], iteration_bounds = array<i64: 1>, scalar_prefetch = 0 : i64, scratch_operands = 1 : i64, tpu.core_type = #tpu.core_type<tc>, window_params = [{transform_indices = @transform_0, window_bounds = array<i64: 8, 2, 32>}, {pipeline_mode = #tpu.pipeline_mode<synchronous>, transform_indices = @transform_1, window_bounds = array<i64: 2, 1>}, {pipeline_mode = #tpu.pipeline_mode<synchronous>, transform_indices = @transform_2, window_bounds = array<i64: 8, 32>}, {pipeline_mode = #tpu.pipeline_mode<synchronous>, transform_indices = @transform_3, window_bounds = array<i64: 1, 8>}, {pipeline_mode = #tpu.pipeline_mode<synchronous>, transform_indices = @transform_4, window_bounds = array<i64: 2, 8>}]} {
    %c0_i32 = arith.constant 0 : i32
    %0 = arith.cmpi eq, %arg0, %c0_i32 : i32
    %1 = arith.extui %0 : i1 to i32
    %c0_i32_0 = arith.constant 0 : i32
    %2 = arith.cmpi ne, %1, %c0_i32_0 : i32
    scf.if %2 {
      %cst_9 = arith.constant 0.000000e+00 : f32
      %11 = vector.broadcast %cst_9 : f32 to vector<2x32xf32>
      %c0_10 = arith.constant 0 : index
      %c0_11 = arith.constant 0 : index
      %12 = vector.load %arg6[%c0_10, %c0_11] : memref<2x32xf32, #tpu.memory_space<vmem>>, vector<2x32xf32>
      tpu.vector_store %arg6[%c0_10, %c0_11], %11 {strides = array<i32>} : memref<2x32xf32, #tpu.memory_space<vmem>>, vector<2x32xf32>,
    } else {
    }
    %c0 = arith.constant 0 : index
    %c0_1 = arith.constant 0 : index
    %3 = vector.load %arg6[%c0, %c0_1] : memref<2x32xf32, #tpu.memory_space<vmem>>, vector<2x32xf32>
    %c0_2 = arith.constant 0 : index
    %c0_3 = arith.constant 0 : index
    %c0_4 = arith.constant 0 : index
    %4 = vector.load %arg1[%c0_2, %c0_3, %c0_4] : memref<8x2x32xf32, #tpu.memory_space<vmem>>, vector<8x2x32xf32>
    %cst = arith.constant dense<0.000000e+00> : vector<2x32xf32>
    %5 = vector.multi_reduction <add>, %4, %cst [0] : vector<8x2x32xf32> to vector<2x32xf32>
    %6 = arith.addf %3, %5 : vector<2x32xf32>
    %c0_5 = arith.constant 0 : index
    %c0_6 = arith.constant 0 : index
    %7 = vector.load %arg6[%c0_5, %c0_6] : memref<2x32xf32, #tpu.memory_space<vmem>>, vector<2x32xf32>
    tpu.vector_store %arg6[%c0_5, %c0_6], %6 {strides = array<i32>} : memref<2x32xf32, #tpu.memory_space<vmem>>, vector<2x32xf32>,
    %c0_i32_7 = arith.constant 0 : i32
    %8 = arith.cmpi eq, %arg0, %c0_i32_7 : i32
    %9 = arith.extui %8 : i1 to i32
    %c0_i32_8 = arith.constant 0 : i32
    %10 = arith.cmpi ne, %9, %c0_i32_8 : i32
    scf.if %10 {
      %c0_9 = arith.constant 0 : index
      %c0_10 = arith.constant 0 : index
      %11 = vector.load %arg6[%c0_9, %c0_10] : memref<2x32xf32, #tpu.memory_space<vmem>>, vector<2x32xf32>
      %c0_11 = arith.constant 0 : index
      %c0_12 = arith.constant 0 : index
      %12 = vector.load %arg3[%c0_11, %c0_12] : memref<8x32xf32, #tpu.memory_space<vmem>>, vector<8x32xf32>
      %cst_13 = arith.constant dense<0.000000e+00> : vector<2x8xf32>
      %13 = tpu.matmul %11, %12, %cst_13 {dimension_numbers = #tpu.dot_dimension_numbers<[1], [1], [0], [0], [0, 0, 1, 0], [], []>} : vector<2x32xf32>, vector<8x32xf32>, vector<2x8xf32> -> vector<2x8xf32>
      %c0_14 = arith.constant 0 : index
      %c0_15 = arith.constant 0 : index
      %14 = vector.load %arg2[%c0_14, %c0_15] : memref<2x1xf32, #tpu.memory_space<vmem>>, vector<2x1xf32>
      %15 = vector.broadcast %14 : vector<2x1xf32> to vector<2x8xf32>
      %16 = arith.mulf %13, %15 : vector<2x8xf32>
      %c0_16 = arith.constant 0 : index
      %c0_17 = arith.constant 0 : index
      %17 = vector.load %arg4[%c0_16, %c0_17] : memref<1x8xf32, #tpu.memory_space<vmem>>, vector<1x8xf32>
      %18 = vector.broadcast %17 : vector<1x8xf32> to vector<2x8xf32>
      %19 = arith.addf %16, %18 : vector<2x8xf32>
      %c0_18 = arith.constant 0 : index
      %c0_19 = arith.constant 0 : index
      %20 = vector.load %arg5[%c0_18, %c0_19] : memref<2x8xf32, #tpu.memory_space<vmem>>, vector<2x8xf32>
      tpu.vector_store %arg5[%c0_18, %c0_19], %19 {strides = array<i32>} : memref<2x8xf32, #tpu.memory_space<vmem>>, vector<2x8xf32>,
    } else {
    }
    return
  }
  func.func @transform_0(%arg0: i32) -> (i32, i32, i32) {
    %c0_i32 = arith.constant 0 : i32
    %c0_i32_0 = arith.constant 0 : i32
    %c0_i32_1 = arith.constant 0 : i32
    return %arg0, %c0_i32, %c0_i32_0 : i32, i32, i32
  }
  func.func @transform_1(%arg0: i32) -> (i32, i32) {
    %c0_i32 = arith.constant 0 : i32
    %c0_i32_0 = arith.constant 0 : i32
    %c0_i32_1 = arith.constant 0 : i32
    return %c0_i32, %c0_i32_0 : i32, i32
  }
  func.func @transform_2(%arg0: i32) -> (i32, i32) {
    %c0_i32 = arith.constant 0 : i32
    %c0_i32_0 = arith.constant 0 : i32
    %c0_i32_1 = arith.constant 0 : i32
    return %c0_i32, %c0_i32_0 : i32, i32
  }
  func.func @transform_3(%arg0: i32) -> (i32, i32) {
    %c0_i32 = arith.constant 0 : i32
    %c0_i32_0 = arith.constant 0 : i32
    %c0_i32_1 = arith.constant 0 : i32
    return %c0_i32, %c0_i32_0 : i32, i32
  }
  func.func @transform_4(%arg0: i32) -> (i32, i32) {
    %c0_i32 = arith.constant 0 : i32
    %c0_i32_0 = arith.constant 0 : i32
    %c0_i32_1 = arith.constant 0 : i32
    return %c0_i32, %c0_i32_0 : i32, i32
  }
}

</mosaic_0001>

<bundles_post_ra>
// kernel: tpu_custom_call.1
= control target key start
LH: loop header
LB: loop body
LE: loop exit
PB: predicated region body
PF: predicated region fallthrough
CT: control target
= control target key end

     0   :  { %9 = vsyncpa [#allocation4], 0  ;;  %s322_s0 = inlined_call_operand.hbm [shape: f32[8,2,32], index: 0, kind: input, shape index: {}]   ;;  %s323_s1 = inlined_call_operand.vmem [shape: f32[2,1], index: 1, kind: input, shape index: {}]   ;;  %s324_s2 = inlined_call_operand.vmem [shape: f32[8,32], index: 2, kind: input, shape index: {}]   ;;  %s325_s3 = inlined_call_operand.vmem [shape: f32[1,8], index: 3, kind: input, shape index: {}]   ;;  %s326_s4 = inlined_call_operand.hbm [shape: f32[2,8], index: 4, kind: output, shape index: {}]  }
   0x1   :  { %10 = vsyncpa [#allocation5], 0  ;;  %s245_s15 = smov [#allocation3]   ;;  %s197_s19 = scalar_lea.hbm %s322_s0, 256 }
   0x2   :  { %s16_s16 = sshll.u32 %s245_s15, 4  ;;  %p198_p0 = scmp.ne.s32.totalorder %s322_s0, %s197_s19  ;;  %s17_s16 = int_to_ptr.vmem [resolvable:$true] %s16_s16 }
   0x3   :  { %p201_p1 = scmp.lt.u32.totalorder %s197_s19, %s322_s0 }
   0x5   :  { %p203_p2 = pnand %p201_p1, %p198_p0 }
   0x7   :  { %206 = shalt.err (!%p203_p2)
}
   0x8   :  { %s207_s24 = scalar_lea.vmem %s17_s16, 256  ;;  %p212_p4 = scmp.lt.s32.totalorder %s17_s16, %s17_s16 }
   0x9   :  { %p208_p3 = scmp.ne.s32.totalorder %s17_s16, %s207_s24  ;;  %p213_p5 = scmp.lt.s32.totalorder %s207_s24, %s207_s24 }
   0xb   :  { %p214_p6 = por %p213_p5, %p212_p4 }
   0xd   :  { %p215_p7 = pnand %p214_p6, %p208_p3 }
   0xf   :  { %218 = shalt.err (!%p215_p7)
}
  0x10   :  { %s246_s25 = smov 32   ;;  %s247_s26 = smov 2  }
  0x11   :  { %22 = dma.hbm_to_vmem [thread:$0]  %s322_s0, 256, %s17_s16, [#allocation4], %s246_s25, %s246_s25, %s247_s26  }
  0x12   :  { %241 = dma.done.wait [#allocation4], 256  }
  0x13   :  { %242 = vsyncadd [#allocation4], 4294967040  ;;  %vm36_vm0 = vcmask 254976   ;;  %v248_v0 = vmov 0.0   ;;  %vm249_vm1 = vmmov 0   ;;  %v250_v1 = vmov 0  }
  0x14   :  { %37 = vst.msk [vmem:[#allocation2] sm:$0x3] %vm36_vm0, %v248_v0  ;;  %184 = vmatprep.subr.mxu0 %v248_v0  ;;  %186 = vmatprep.mubr.msk.f32.mxu0 %vm249_vm1, %v248_v0  ;;  %v39_v2 = vld [vmem:[#allocation3] sm:$0x3]  ;;  %v40_v3 = vld [vmem:[#allocation3 + $0x2] sm:$0x3] }
  0x15   :  { %196 = vset.pattern.permute.xlu0 %v250_v1  ;;  %v41_v4 = vld [vmem:[#allocation3 + $0x4] sm:$0x3]  ;;  %vm70_vm2 = vcmask 261120   ;;  %v42_v5 = vld [vmem:[#allocation3 + $0x6] sm:$0x3]  ;;  %v48_v6 = vsel %vm36_vm0, %v39_v2, 0.0 }
  0x16   :  { %v49_v7 = vsel %vm36_vm0, %v40_v3, 0.0  ;;  %v51_v8 = vsel %vm36_vm0, %v41_v4, 0.0  ;;  %v69_v9 = vld [vmem:[%s324_s2] sm:$0xff]  ;;  %v43_v10 = vld [vmem:[#allocation3 + $0x8] sm:$0x3]  ;;  %v53_v13 = vsel %vm36_vm0, %v42_v5, 0.0 }
  0x17   :  { %v50_v11 = vadd.f32 %v49_v7, %v48_v6  ;;  %185 = vmatpush3.xpose.msk.msra.mxu0 %vm70_vm2, %v69_v9  ;;  %v147_v12 = vld [vmem:[%s323_s1] sm:$0x3]  ;;  %v44_v14 = vld [vmem:[#allocation3 + $0xa] sm:$0x3]  ;;  %v55_v16 = vsel %vm36_vm0, %v43_v10, 0.0  ;;  %s251_s6 = smov [#allocation6]  }
  0x18   :  { %150 = vperm.xlu0 %196, %v147_v12   ;;  %v45_v17 = vld [vmem:[#allocation3 + $0xc] sm:$0x3]  ;;  %v57_v19 = vsel %vm36_vm0, %v44_v14, 0.0  ;;  %v46_v20 = vld [vmem:[#allocation3 + $0xe] sm:$0x3]  ;;  %s170_s7 = sshll.u32 %s251_s6, 4  ;;  %s171_s7 = int_to_ptr.vmem [resolvable:$true] %s170_s7 }
  0x19   :  { %v52_v15 = vadd.f32 %v51_v8, %v50_v11  ;;  %v59_v22 = vsel %vm36_vm0, %v45_v17, 0.0  ;;  %v61_v24 = vsel %vm36_vm0, %v46_v20, 0.0  ;;  %v181_v32 = vld [vmem:[%s325_s3] ss:$0 sm:$0xff]  ;;  %vm162_vm3 = vcmask 58368   ;;  %s219_s8 = scalar_lea.vmem %s171_s7, 32  ;;  %p224_p9 = scmp.lt.s32.totalorder %s171_s7, %s171_s7 }
  0x1a   :  { %p220_p8 = scmp.ne.s32.totalorder %s171_s7, %s219_s8  ;;  %p225_p10 = scmp.lt.s32.totalorder %s219_s8, %s219_s8 }
  0x1b   :  { %v54_v18 = vadd.f32 %v53_v13, %v52_v15  ;;  %v38_v26 = vld [vmem:[#allocation2] sm:$0x3] }
  0x1c   :  { %p226_p11 = por %p225_p10, %p224_p9 }
  0x1d   :  { %v56_v21 = vadd.f32 %v55_v16, %v54_v18 }
  0x1e   :  { %p227_p12 = pnand %p226_p11, %p220_p8 }
  0x1f   :  { %v58_v23 = vadd.f32 %v57_v19, %v56_v21 }
  0x21   :  { %v60_v25 = vadd.f32 %v59_v22, %v58_v23 }
  0x23   :  { %v62_v27 = vadd.f32 %v61_v24, %v60_v25 }
  0x25   :  { %v63_v28 = vadd.f32 %v62_v27, %v38_v26 }
  0x27   :  { %64 = vst.msk [vmem:[#allocation2] sm:$0x3] %vm36_vm0, %v63_v28 }
  0x2e   :  { %v68_v29 = vld [vmem:[#allocation2] sm:$0x3] }
  0x2f   :  { %187 = vmatmul.mubr.msk.f32.vlgmr.msra.gmra.mrb[0].mxu0 %vm70_vm2, %v68_v29 }
  0x97   :  { %v151_v30 = vpop.permute.xlu0 %150 }
 0x102   :  { %v143_v31 = vpop.f32.mrb[0].mxu0 }
 0x103   :  { %v153_v33 = vmul.f32 %v151_v30, %v143_v31  ;;  %v188_v34 = vpop.f32.mrb[1].mxu0 }
 0x105   :  { %v161_v35 = vadd.f32 %v181_v32, %v153_v33 }
 0x107   :  { %163 = vst.msk [vmem:[#allocation6] sm:$0x3] %vm162_vm3, %v161_v35 }
 0x108   :  { %230 = shalt.err (!%p227_p12)
}
 0x109   :  { %s231_s11 = scalar_lea.hbm %s326_s4, 32 }
 0x10a   :  { %p232_p13 = scmp.ne.s32.totalorder %s326_s4, %s231_s11  ;;  %p235_p0 = scmp.lt.u32.totalorder %s231_s11, %s326_s4 }
 0x10c   :  { %p237_p1 = pnand %p235_p0, %p232_p13 }
 0x10e   :  { %240 = shalt.err (!%p237_p1)
}
 0x10f   :  { %173 = dma.vmem_to_hbm [thread:$0]  %s171_s7, 32, %s326_s4, [#allocation5]  }
 0x110   :  { %243 = dma.done.wait [#allocation5], 32  }
 0x111   :  { %244 = vsyncadd [#allocation5], 4294967264 }
 0x112   :  { %177 = vsyncpa [#allocation4], 1 }
 0x113   :  { %178 = vsyncpa [#allocation5], 1 }

</bundles_post_ra>
